<compile_context>
chip_gen: v7x
topology: tpu7x:2x2x1
jax: 0.10.0
libtpu: 0.0.40
codegen_flags: <defaults>
</compile_context>

<pallas_src>
import functools
import math

import jax
import jax.numpy as jnp
from jax import lax
from jax.experimental import pallas as pl
from jax.experimental.pallas import tpu as pltpu

BN_EPS = 1e-5
LANES = 128

# ---- packed small-parameter vector (SMEM, f32) layout -----------------------------------
G1, BE1 = 0, 2            # bn1 gamma (2), beta (2)
W2 = 4                    # fc2 weight (5, 2) row-major (10)
G2, BE2 = 14, 19          # bn2 gamma (5), beta (5)
W3 = 24                   # fc3 weight (2, 5) row-major (10)
B3 = 34                   # fc3 bias (2)
W4 = 36                   # out weight (2, 2) row-major (4)
B4 = 40                   # out bias (2)
PVEC_LEN = 42


def resnet_classifier_kernel(x_ref, w1_ref, p_ref, out_ref, *, batch):
    # x_ref  : (K, Bp) f32 VMEM   -- batch rides the lane axis
    # w1_ref : (2, K)  f32 VMEM   -- fc1 weight, PyTorch (out, in) layout
    # p_ref  : (PVEC_LEN,) f32 SMEM -- all tiny parameters, read as scalars
    # out_ref: (2, Bp) f32 VMEM   -- lane-dense output slab (transposed back in the wrapper)
    bp = x_ref.shape[1]
    inv_b = 1.0 / batch

    x = x_ref[...]
    w1 = w1_ref[...]

    # ---- fc1 on the MXU: (2, K) @ (K, Bp) -> (2, Bp).  b1 omitted (cancelled by BN1 mean) ----
    a1 = jnp.dot(w1, x, preferred_element_type=jnp.float32)

    # Padded batch columns of x are zero -> padded columns of a1 are zero (no bias), so they do
    # not pollute the sums below.  After BN+ReLU they would become non-zero, so mask them back
    # to zero to keep BN2's statistics clean.
    if bp != batch:
        lane = lax.broadcasted_iota(jnp.int32, (1, bp), 1)
        mask = (lane < batch).astype(jnp.float32)          # (1, Bp)
    else:
        mask = None

    def bn_relu_row(row, g, be):
        # row: (1, Bp).  One-pass stats: biased variance via E[x^2] - E[x]^2 (training mode).
        s = jnp.sum(row, axis=-1, keepdims=True)           # (1, 1)
        ss = jnp.sum(row * row, axis=-1, keepdims=True)    # (1, 1)
        mean = s * inv_b
        var = ss * inv_b - mean * mean
        scale = lax.rsqrt(var + BN_EPS) * g
        out = jnp.maximum((row - mean) * scale + be, 0.0)
        if mask is not None:
            out = out * mask
        return out

    # ---- bn1 + relu, per channel (C = 2) ----
    h1 = [bn_relu_row(a1[c:c + 1, :], p_ref[G1 + c], p_ref[BE1 + c]) for c in range(2)]

    # ---- fc2 (2 -> 5): unrolled VPU scalar FMAs.  b2 omitted (cancelled by BN2 mean) ----
    a2 = [p_ref[W2 + 2 * j] * h1[0] + p_ref[W2 + 2 * j + 1] * h1[1] for j in range(5)]

    # ---- bn2 + relu (C = 5) ----
    h2 = [bn_relu_row(a2[c], p_ref[G2 + c], p_ref[BE2 + c]) for c in range(5)]

    # ---- fc3 (5 -> 2) + relu ("prelu" attribute is actually nn.ReLU()) ----
    h3 = []
    for j in range(2):
        acc = p_ref[W3 + 5 * j] * h2[0]
        for i in range(1, 5):
            acc = acc + p_ref[W3 + 5 * j + i] * h2[i]
        h3.append(jnp.maximum(acc + p_ref[B3 + j], 0.0))

    # ---- out (2 -> 2) ----
    rows = [
        p_ref[W4 + 2 * j] * h3[0] + p_ref[W4 + 2 * j + 1] * h3[1] + p_ref[B4 + j]
        for j in range(2)
    ]
    out_ref[...] = jnp.concatenate(rows, axis=0)           # single lane-dense store


def resnet_classifier_forward(x, params):
    """x: (B, input_dim) f32 (PyTorch (N, C) convention).  Returns (B, 2) f32."""
    b, k = x.shape
    bp = ((b + LANES - 1) // LANES) * LANES                # pad batch to a lane multiple

    # Layout plumbing: put the batch on the lane axis (lane-dense activations in the kernel).
    x_t = jnp.pad(x.T.astype(jnp.float32), ((0, 0), (0, bp - b)))

    # Pack every tiny parameter into one flat SMEM vector (one DMA instead of ~11).
    pvec = jnp.concatenate([
        params["g1"], params["be1"],
        params["w2"].reshape(-1),
        params["g2"], params["be2"],
        params["w3"].reshape(-1),
        params["b3"],
        params["w4"].reshape(-1),
        params["b4"],
    ]).astype(jnp.float32)
    assert pvec.shape[0] == PVEC_LEN

    kernel = functools.partial(resnet_classifier_kernel, batch=b)
    out_t = pl.pallas_call(
        kernel,
        out_shape=jax.ShapeDtypeStruct((2, bp), jnp.float32),
        in_specs=[
            pl.BlockSpec(memory_space=pltpu.MemorySpace.VMEM),   # x_t (K, Bp)
            pl.BlockSpec(memory_space=pltpu.MemorySpace.VMEM),   # w1  (2, K)
            pl.BlockSpec(memory_space=pltpu.MemorySpace.SMEM),   # packed small params
        ],
        out_specs=pl.BlockSpec(memory_space=pltpu.MemorySpace.VMEM),
        compiler_params=pltpu.CompilerParams(
            vmem_limit_bytes=32 * 1024 * 1024,   # explicit, portable across v5e/v6e/v7x
        ),
    )(x_t, params["w1"].astype(jnp.float32), pvec)

    return out_t[:, :b].T                                     # back to (B, 2)


# ------------------------------ init + pure-JAX reference --------------------------------

def xavier_normal(key, out_features, in_features):
    std = math.sqrt(2.0 / (in_features + out_features))
    return std * jax.random.normal(key, (out_features, in_features), dtype=jnp.float32)


def init_params(key, input_dim):
    ks = jax.random.split(key, 12)
    # Linear weights: xavier_normal_, PyTorch (out, in) layout.  Biases / BN affine params are
    # given small non-zero random values (PyTorch init zeroes them) so the kernel's
    # bias-cancellation and BN-affine paths are genuinely exercised by the check below.
    return {
        "w1": xavier_normal(ks[0], 2, input_dim),
        "b1": 0.1 * jax.random.normal(ks[1], (2,), jnp.float32),    # reference only (cancelled)
        "g1": 1.0 + 0.1 * jax.random.normal(ks[2], (2,), jnp.float32),
        "be1": 0.1 * jax.random.normal(ks[3], (2,), jnp.float32),
        "w2": xavier_normal(ks[4], 5, 2),
        "b2": 0.1 * jax.random.normal(ks[5], (5,), jnp.float32),    # reference only (cancelled)
        "g2": 1.0 + 0.1 * jax.random.normal(ks[6], (5,), jnp.float32),
        "be2": 0.1 * jax.random.normal(ks[7], (5,), jnp.float32),
        "w3": xavier_normal(ks[8], 2, 5),
        "b3": 0.1 * jax.random.normal(ks[9], (2,), jnp.float32),
        "w4": xavier_normal(ks[10], 2, 2),
        "b4": 0.1 * jax.random.normal(ks[11], (2,), jnp.float32),
    }


def reference_forward(x, params):
    def bn(a, g, be):
        m = a.mean(0, keepdims=True)
        v = ((a - m) ** 2).mean(0, keepdims=True)
        return (a - m) / jnp.sqrt(v + BN_EPS) * g + be

    a1 = x @ params["w1"].T + params["b1"]
    h1 = jnp.maximum(bn(a1, params["g1"], params["be1"]), 0.0)
    a2 = h1 @ params["w2"].T + params["b2"]
    h2 = jnp.maximum(bn(a2, params["g2"], params["be2"]), 0.0)
    a3 = h2 @ params["w3"].T + params["b3"]
    h3 = jnp.maximum(a3, 0.0)
    return h3 @ params["w4"].T + params["b4"]


if __name__ == "__main__":
    key = jax.random.PRNGKey(0)
    kx, kp = jax.random.split(key)

    batch, input_dim = 8, 32   # small shapes consistent with fc1(input_dim -> 2)
    x = jax.random.normal(kx, (batch, input_dim), dtype=jnp.float32)
    params = init_params(kp, input_dim)

    out = resnet_classifier_forward(x, params)
    out = jax.block_until_ready(out)

    ref = reference_forward(x, params)
    assert out.shape == (batch, 2)
    assert jnp.allclose(out, ref, atol=1e-4, rtol=1e-4), "mismatch vs reference"

    print("KERNEL_OK")
</pallas_src>

<mosaic_0001>
module attributes {stable_mosaic.version = 11 : i64} {
  func.func @resnet_classifier_kernel(%arg0: memref<32x128xf32, #tpu.memory_space<vmem>>, %arg1: memref<2x32xf32, #tpu.memory_space<vmem>>, %arg2: memref<42xf32, #tpu.memory_space<smem>>, %arg3: memref<2x128xf32, #tpu.memory_space<vmem>>) attributes {dimension_semantics = [], scalar_prefetch = 0 : i64, scratch_operands = 0 : i64, tpu.core_type = #tpu.core_type<tc>} {
    %c0 = arith.constant 0 : index
    %c0_0 = arith.constant 0 : index
    %0 = vector.load %arg0[%c0, %c0_0] : memref<32x128xf32, #tpu.memory_space<vmem>>, vector<32x128xf32>
    %c0_1 = arith.constant 0 : index
    %c0_2 = arith.constant 0 : index
    %1 = vector.load %arg1[%c0_1, %c0_2] : memref<2x32xf32, #tpu.memory_space<vmem>>, vector<2x32xf32>
    %cst = arith.constant dense<0.000000e+00> : vector<2x128xf32>
    %2 = tpu.matmul %1, %0, %cst {dimension_numbers = #tpu.dot_dimension_numbers<[1], [0], [0], [1], [0, 0, 1, 1], [], []>} : vector<2x32xf32>, vector<32x128xf32>, vector<2x128xf32> -> vector<2x128xf32>
    %3 = tpu.iota {dimensions = array<i32: 1>} : vector<1x128xi32>
    %c8_i32 = arith.constant 8 : i32
    %4 = vector.broadcast %c8_i32 : i32 to vector<1x128xi32>
    %5 = arith.cmpi slt, %3, %4 : vector<1x128xi32>
    %6 = arith.extui %5 : vector<1x128xi1> to vector<1x128xi32>
    %7 = arith.sitofp %6 : vector<1x128xi32> to vector<1x128xf32>
    %8 = vector.extract_strided_slice %2 {offsets = [0, 0], sizes = [1, 128], strides = [1, 1]} : vector<2x128xf32> to vector<1x128xf32>
    %c0_3 = arith.constant 0 : index
    %9 = memref.load %arg2[%c0_3] : memref<42xf32, #tpu.memory_space<smem>>
    %c2 = arith.constant 2 : index
    %10 = memref.load %arg2[%c2] : memref<42xf32, #tpu.memory_space<smem>>
    %cst_4 = arith.constant dense<0.000000e+00> : vector<1xf32>
    %11 = vector.multi_reduction <add>, %8, %cst_4 [1] : vector<1x128xf32> to vector<1xf32>
    %12 = vector.shape_cast %11 : vector<1xf32> to vector<1x1xf32>
    %13 = arith.mulf %8, %8 : vector<1x128xf32>
    %cst_5 = arith.constant dense<0.000000e+00> : vector<1xf32>
    %14 = vector.multi_reduction <add>, %13, %cst_5 [1] : vector<1x128xf32> to vector<1xf32>
    %15 = vector.shape_cast %14 : vector<1xf32> to vector<1x1xf32>
    %cst_6 = arith.constant 1.250000e-01 : f32
    %16 = vector.broadcast %cst_6 : f32 to vector<1x1xf32>
    %17 = arith.mulf %12, %16 : vector<1x1xf32>
    %cst_7 = arith.constant 1.250000e-01 : f32
    %18 = vector.broadcast %cst_7 : f32 to vector<1x1xf32>
    %19 = arith.mulf %15, %18 : vector<1x1xf32>
    %20 = arith.mulf %17, %17 : vector<1x1xf32>
    %21 = arith.subf %19, %20 : vector<1x1xf32>
    %cst_8 = arith.constant 9.99999974E-6 : f32
    %22 = vector.broadcast %cst_8 : f32 to vector<1x1xf32>
    %23 = arith.addf %21, %22 : vector<1x1xf32>
    %24 = math.rsqrt %23 : vector<1x1xf32>
    %25 = vector.broadcast %9 : f32 to vector<1x1xf32>
    %26 = arith.mulf %24, %25 : vector<1x1xf32>
    %27 = vector.broadcast %17 : vector<1x1xf32> to vector<1x128xf32>
    %28 = arith.subf %8, %27 : vector<1x128xf32>
    %29 = vector.broadcast %26 : vector<1x1xf32> to vector<1x128xf32>
    %30 = arith.mulf %28, %29 : vector<1x128xf32>
    %31 = vector.broadcast %10 : f32 to vector<1x128xf32>
    %32 = arith.addf %30, %31 : vector<1x128xf32>
    %cst_9 = arith.constant 0.000000e+00 : f32
    %33 = vector.broadcast %cst_9 : f32 to vector<1x128xf32>
    %34 = arith.maximumf %32, %33 : vector<1x128xf32>
    %35 = arith.mulf %34, %7 : vector<1x128xf32>
    %36 = vector.extract_strided_slice %2 {offsets = [1, 0], sizes = [1, 128], strides = [1, 1]} : vector<2x128xf32> to vector<1x128xf32>
    %c1 = arith.constant 1 : index
    %37 = memref.load %arg2[%c1] : memref<42xf32, #tpu.memory_space<smem>>
    %c3 = arith.constant 3 : index
    %38 = memref.load %arg2[%c3] : memref<42xf32, #tpu.memory_space<smem>>
    %cst_10 = arith.constant dense<0.000000e+00> : vector<1xf32>
    %39 = vector.multi_reduction <add>, %36, %cst_10 [1] : vector<1x128xf32> to vector<1xf32>
    %40 = vector.shape_cast %39 : vector<1xf32> to vector<1x1xf32>
    %41 = arith.mulf %36, %36 : vector<1x128xf32>
    %cst_11 = arith.constant dense<0.000000e+00> : vector<1xf32>
    %42 = vector.multi_reduction <add>, %41, %cst_11 [1] : vector<1x128xf32> to vector<1xf32>
    %43 = vector.shape_cast %42 : vector<1xf32> to vector<1x1xf32>
    %cst_12 = arith.constant 1.250000e-01 : f32
    %44 = vector.broadcast %cst_12 : f32 to vector<1x1xf32>
    %45 = arith.mulf %40, %44 : vector<1x1xf32>
    %cst_13 = arith.constant 1.250000e-01 : f32
    %46 = vector.broadcast %cst_13 : f32 to vector<1x1xf32>
    %47 = arith.mulf %43, %46 : vector<1x1xf32>
    %48 = arith.mulf %45, %45 : vector<1x1xf32>
    %49 = arith.subf %47, %48 : vector<1x1xf32>
    %cst_14 = arith.constant 9.99999974E-6 : f32
    %50 = vector.broadcast %cst_14 : f32 to vector<1x1xf32>
    %51 = arith.addf %49, %50 : vector<1x1xf32>
    %52 = math.rsqrt %51 : vector<1x1xf32>
    %53 = vector.broadcast %37 : f32 to vector<1x1xf32>
    %54 = arith.mulf %52, %53 : vector<1x1xf32>
    %55 = vector.broadcast %45 : vector<1x1xf32> to vector<1x128xf32>
    %56 = arith.subf %36, %55 : vector<1x128xf32>
    %57 = vector.broadcast %54 : vector<1x1xf32> to vector<1x128xf32>
    %58 = arith.mulf %56, %57 : vector<1x128xf32>
    %59 = vector.broadcast %38 : f32 to vector<1x128xf32>
    %60 = arith.addf %58, %59 : vector<1x128xf32>
    %cst_15 = arith.constant 0.000000e+00 : f32
    %61 = vector.broadcast %cst_15 : f32 to vector<1x128xf32>
    %62 = arith.maximumf %60, %61 : vector<1x128xf32>
    %63 = arith.mulf %62, %7 : vector<1x128xf32>
    %c4 = arith.constant 4 : index
    %64 = memref.load %arg2[%c4] : memref<42xf32, #tpu.memory_space<smem>>
    %65 = vector.broadcast %64 : f32 to vector<1x128xf32>
    %66 = arith.mulf %65, %35 : vector<1x128xf32>
    %c5 = arith.constant 5 : index
    %67 = memref.load %arg2[%c5] : memref<42xf32, #tpu.memory_space<smem>>
    %68 = vector.broadcast %67 : f32 to vector<1x128xf32>
    %69 = arith.mulf %68, %63 : vector<1x128xf32>
    %70 = arith.addf %66, %69 : vector<1x128xf32>
    %c6 = arith.constant 6 : index
    %71 = memref.load %arg2[%c6] : memref<42xf32, #tpu.memory_space<smem>>
    %72 = vector.broadcast %71 : f32 to vector<1x128xf32>
    %73 = arith.mulf %72, %35 : vector<1x128xf32>
    %c7 = arith.constant 7 : index
    %74 = memref.load %arg2[%c7] : memref<42xf32, #tpu.memory_space<smem>>
    %75 = vector.broadcast %74 : f32 to vector<1x128xf32>
    %76 = arith.mulf %75, %63 : vector<1x128xf32>
    %77 = arith.addf %73, %76 : vector<1x128xf32>
    %c8 = arith.constant 8 : index
    %78 = memref.load %arg2[%c8] : memref<42xf32, #tpu.memory_space<smem>>
    %79 = vector.broadcast %78 : f32 to vector<1x128xf32>
    %80 = arith.mulf %79, %35 : vector<1x128xf32>
    %c9 = arith.constant 9 : index
    %81 = memref.load %arg2[%c9] : memref<42xf32, #tpu.memory_space<smem>>
    %82 = vector.broadcast %81 : f32 to vector<1x128xf32>
    %83 = arith.mulf %82, %63 : vector<1x128xf32>
    %84 = arith.addf %80, %83 : vector<1x128xf32>
    %c10 = arith.constant 10 : index
    %85 = memref.load %arg2[%c10] : memref<42xf32, #tpu.memory_space<smem>>
    %86 = vector.broadcast %85 : f32 to vector<1x128xf32>
    %87 = arith.mulf %86, %35 : vector<1x128xf32>
    %c11 = arith.constant 11 : index
    %88 = memref.load %arg2[%c11] : memref<42xf32, #tpu.memory_space<smem>>
    %89 = vector.broadcast %88 : f32 to vector<1x128xf32>
    %90 = arith.mulf %89, %63 : vector<1x128xf32>
    %91 = arith.addf %87, %90 : vector<1x128xf32>
    %c12 = arith.constant 12 : index
    %92 = memref.load %arg2[%c12] : memref<42xf32, #tpu.memory_space<smem>>
    %93 = vector.broadcast %92 : f32 to vector<1x128xf32>
    %94 = arith.mulf %93, %35 : vector<1x128xf32>
    %c13 = arith.constant 13 : index
    %95 = memref.load %arg2[%c13] : memref<42xf32, #tpu.memory_space<smem>>
    %96 = vector.broadcast %95 : f32 to vector<1x128xf32>
    %97 = arith.mulf %96, %63 : vector<1x128xf32>
    %98 = arith.addf %94, %97 : vector<1x128xf32>
    %c14 = arith.constant 14 : index
    %99 = memref.load %arg2[%c14] : memref<42xf32, #tpu.memory_space<smem>>
    %c19 = arith.constant 19 : index
    %100 = memref.load %arg2[%c19] : memref<42xf32, #tpu.memory_space<smem>>
    %cst_16 = arith.constant dense<0.000000e+00> : vector<1xf32>
    %101 = vector.multi_reduction <add>, %70, %cst_16 [1] : vector<1x128xf32> to vector<1xf32>
    %102 = vector.shape_cast %101 : vector<1xf32> to vector<1x1xf32>
    %103 = arith.mulf %70, %70 : vector<1x128xf32>
    %cst_17 = arith.constant dense<0.000000e+00> : vector<1xf32>
    %104 = vector.multi_reduction <add>, %103, %cst_17 [1] : vector<1x128xf32> to vector<1xf32>
    %105 = vector.shape_cast %104 : vector<1xf32> to vector<1x1xf32>
    %cst_18 = arith.constant 1.250000e-01 : f32
    %106 = vector.broadcast %cst_18 : f32 to vector<1x1xf32>
    %107 = arith.mulf %102, %106 : vector<1x1xf32>
    %cst_19 = arith.constant 1.250000e-01 : f32
    %108 = vector.broadcast %cst_19 : f32 to vector<1x1xf32>
    %109 = arith.mulf %105, %108 : vector<1x1xf32>
    %110 = arith.mulf %107, %107 : vector<1x1xf32>
    %111 = arith.subf %109, %110 : vector<1x1xf32>
    %cst_20 = arith.constant 9.99999974E-6 : f32
    %112 = vector.broadcast %cst_20 : f32 to vector<1x1xf32>
    %113 = arith.addf %111, %112 : vector<1x1xf32>
    %114 = math.rsqrt %113 : vector<1x1xf32>
    %115 = vector.broadcast %99 : f32 to vector<1x1xf32>
    %116 = arith.mulf %114, %115 : vector<1x1xf32>
    %117 = vector.broadcast %107 : vector<1x1xf32> to vector<1x128xf32>
    %118 = arith.subf %70, %117 : vector<1x128xf32>
    %119 = vector.broadcast %116 : vector<1x1xf32> to vector<1x128xf32>
    %120 = arith.mulf %118, %119 : vector<1x128xf32>
    %121 = vector.broadcast %100 : f32 to vector<1x128xf32>
    %122 = arith.addf %120, %121 : vector<1x128xf32>
    %cst_21 = arith.constant 0.000000e+00 : f32
    %123 = vector.broadcast %cst_21 : f32 to vector<1x128xf32>
    %124 = arith.maximumf %122, %123 : vector<1x128xf32>
    %125 = arith.mulf %124, %7 : vector<1x128xf32>
    %c15 = arith.constant 15 : index
    %126 = memref.load %arg2[%c15] : memref<42xf32, #tpu.memory_space<smem>>
    %c20 = arith.constant 20 : index
    %127 = memref.load %arg2[%c20] : memref<42xf32, #tpu.memory_space<smem>>
    %cst_22 = arith.constant dense<0.000000e+00> : vector<1xf32>
    %128 = vector.multi_reduction <add>, %77, %cst_22 [1] : vector<1x128xf32> to vector<1xf32>
    %129 = vector.shape_cast %128 : vector<1xf32> to vector<1x1xf32>
    %130 = arith.mulf %77, %77 : vector<1x128xf32>
    %cst_23 = arith.constant dense<0.000000e+00> : vector<1xf32>
    %131 = vector.multi_reduction <add>, %130, %cst_23 [1] : vector<1x128xf32> to vector<1xf32>
    %132 = vector.shape_cast %131 : vector<1xf32> to vector<1x1xf32>
    %cst_24 = arith.constant 1.250000e-01 : f32
    %133 = vector.broadcast %cst_24 : f32 to vector<1x1xf32>
    %134 = arith.mulf %129, %133 : vector<1x1xf32>
    %cst_25 = arith.constant 1.250000e-01 : f32
    %135 = vector.broadcast %cst_25 : f32 to vector<1x1xf32>
    %136 = arith.mulf %132, %135 : vector<1x1xf32>
    %137 = arith.mulf %134, %134 : vector<1x1xf32>
    %138 = arith.subf %136, %137 : vector<1x1xf32>
    %cst_26 = arith.constant 9.99999974E-6 : f32
    %139 = vector.broadcast %cst_26 : f32 to vector<1x1xf32>
    %140 = arith.addf %138, %139 : vector<1x1xf32>
    %141 = math.rsqrt %140 : vector<1x1xf32>
    %142 = vector.broadcast %126 : f32 to vector<1x1xf32>
    %143 = arith.mulf %141, %142 : vector<1x1xf32>
    %144 = vector.broadcast %134 : vector<1x1xf32> to vector<1x128xf32>
    %145 = arith.subf %77, %144 : vector<1x128xf32>
    %146 = vector.broadcast %143 : vector<1x1xf32> to vector<1x128xf32>
    %147 = arith.mulf %145, %146 : vector<1x128xf32>
    %148 = vector.broadcast %127 : f32 to vector<1x128xf32>
    %149 = arith.addf %147, %148 : vector<1x128xf32>
    %cst_27 = arith.constant 0.000000e+00 : f32
    %150 = vector.broadcast %cst_27 : f32 to vector<1x128xf32>
    %151 = arith.maximumf %149, %150 : vector<1x128xf32>
    %152 = arith.mulf %151, %7 : vector<1x128xf32>
    %c16 = arith.constant 16 : index
    %153 = memref.load %arg2[%c16] : memref<42xf32, #tpu.memory_space<smem>>
    %c21 = arith.constant 21 : index
    %154 = memref.load %arg2[%c21] : memref<42xf32, #tpu.memory_space<smem>>
    %cst_28 = arith.constant dense<0.000000e+00> : vector<1xf32>
    %155 = vector.multi_reduction <add>, %84, %cst_28 [1] : vector<1x128xf32> to vector<1xf32>
    %156 = vector.shape_cast %155 : vector<1xf32> to vector<1x1xf32>
    %157 = arith.mulf %84, %84 : vector<1x128xf32>
    %cst_29 = arith.constant dense<0.000000e+00> : vector<1xf32>
    %158 = vector.multi_reduction <add>, %157, %cst_29 [1] : vector<1x128xf32> to vector<1xf32>
    %159 = vector.shape_cast %158 : vector<1xf32> to vector<1x1xf32>
    %cst_30 = arith.constant 1.250000e-01 : f32
    %160 = vector.broadcast %cst_30 : f32 to vector<1x1xf32>
    %161 = arith.mulf %156, %160 : vector<1x1xf32>
    %cst_31 = arith.constant 1.250000e-01 : f32
    %162 = vector.broadcast %cst_31 : f32 to vector<1x1xf32>
    %163 = arith.mulf %159, %162 : vector<1x1xf32>
    %164 = arith.mulf %161, %161 : vector<1x1xf32>
    %165 = arith.subf %163, %164 : vector<1x1xf32>
    %cst_32 = arith.constant 9.99999974E-6 : f32
    %166 = vector.broadcast %cst_32 : f32 to vector<1x1xf32>
    %167 = arith.addf %165, %166 : vector<1x1xf32>
    %168 = math.rsqrt %167 : vector<1x1xf32>
    %169 = vector.broadcast %153 : f32 to vector<1x1xf32>
    %170 = arith.mulf %168, %169 : vector<1x1xf32>
    %171 = vector.broadcast %161 : vector<1x1xf32> to vector<1x128xf32>
    %172 = arith.subf %84, %171 : vector<1x128xf32>
    %173 = vector.broadcast %170 : vector<1x1xf32> to vector<1x128xf32>
    %174 = arith.mulf %172, %173 : vector<1x128xf32>
    %175 = vector.broadcast %154 : f32 to vector<1x128xf32>
    %176 = arith.addf %174, %175 : vector<1x128xf32>
    %cst_33 = arith.constant 0.000000e+00 : f32
    %177 = vector.broadcast %cst_33 : f32 to vector<1x128xf32>
    %178 = arith.maximumf %176, %177 : vector<1x128xf32>
    %179 = arith.mulf %178, %7 : vector<1x128xf32>
    %c17 = arith.constant 17 : index
    %180 = memref.load %arg2[%c17] : memref<42xf32, #tpu.memory_space<smem>>
    %c22 = arith.constant 22 : index
    %181 = memref.load %arg2[%c22] : memref<42xf32, #tpu.memory_space<smem>>
    %cst_34 = arith.constant dense<0.000000e+00> : vector<1xf32>
    %182 = vector.multi_reduction <add>, %91, %cst_34 [1] : vector<1x128xf32> to vector<1xf32>
    %183 = vector.shape_cast %182 : vector<1xf32> to vector<1x1xf32>
    %184 = arith.mulf %91, %91 : vector<1x128xf32>
    %cst_35 = arith.constant dense<0.000000e+00> : vector<1xf32>
    %185 = vector.multi_reduction <add>, %184, %cst_35 [1] : vector<1x128xf32> to vector<1xf32>
    %186 = vector.shape_cast %185 : vector<1xf32> to vector<1x1xf32>
    %cst_36 = arith.constant 1.250000e-01 : f32
    %187 = vector.broadcast %cst_36 : f32 to vector<1x1xf32>
    %188 = arith.mulf %183, %187 : vector<1x1xf32>
    %cst_37 = arith.constant 1.250000e-01 : f32
    %189 = vector.broadcast %cst_37 : f32 to vector<1x1xf32>
    %190 = arith.mulf %186, %189 : vector<1x1xf32>
    %191 = arith.mulf %188, %188 : vector<1x1xf32>
    %192 = arith.subf %190, %191 : vector<1x1xf32>
    %cst_38 = arith.constant 9.99999974E-6 : f32
    %193 = vector.broadcast %cst_38 : f32 to vector<1x1xf32>
    %194 = arith.addf %192, %193 : vector<1x1xf32>
    %195 = math.rsqrt %194 : vector<1x1xf32>
    %196 = vector.broadcast %180 : f32 to vector<1x1xf32>
    %197 = arith.mulf %195, %196 : vector<1x1xf32>
    %198 = vector.broadcast %188 : vector<1x1xf32> to vector<1x128xf32>
    %199 = arith.subf %91, %198 : vector<1x128xf32>
    %200 = vector.broadcast %197 : vector<1x1xf32> to vector<1x128xf32>
    %201 = arith.mulf %199, %200 : vector<1x128xf32>
    %202 = vector.broadcast %181 : f32 to vector<1x128xf32>
    %203 = arith.addf %201, %202 : vector<1x128xf32>
    %cst_39 = arith.constant 0.000000e+00 : f32
    %204 = vector.broadcast %cst_39 : f32 to vector<1x128xf32>
    %205 = arith.maximumf %203, %204 : vector<1x128xf32>
    %206 = arith.mulf %205, %7 : vector<1x128xf32>
    %c18 = arith.constant 18 : index
    %207 = memref.load %arg2[%c18] : memref<42xf32, #tpu.memory_space<smem>>
    %c23 = arith.constant 23 : index
    %208 = memref.load %arg2[%c23] : memref<42xf32, #tpu.memory_space<smem>>
    %cst_40 = arith.constant dense<0.000000e+00> : vector<1xf32>
    %209 = vector.multi_reduction <add>, %98, %cst_40 [1] : vector<1x128xf32> to vector<1xf32>
    %210 = vector.shape_cast %209 : vector<1xf32> to vector<1x1xf32>
    %211 = arith.mulf %98, %98 : vector<1x128xf32>
    %cst_41 = arith.constant dense<0.000000e+00> : vector<1xf32>
    %212 = vector.multi_reduction <add>, %211, %cst_41 [1] : vector<1x128xf32> to vector<1xf32>
    %213 = vector.shape_cast %212 : vector<1xf32> to vector<1x1xf32>
    %cst_42 = arith.constant 1.250000e-01 : f32
    %214 = vector.broadcast %cst_42 : f32 to vector<1x1xf32>
    %215 = arith.mulf %210, %214 : vector<1x1xf32>
    %cst_43 = arith.constant 1.250000e-01 : f32
    %216 = vector.broadcast %cst_43 : f32 to vector<1x1xf32>
    %217 = arith.mulf %213, %216 : vector<1x1xf32>
    %218 = arith.mulf %215, %215 : vector<1x1xf32>
    %219 = arith.subf %217, %218 : vector<1x1xf32>
    %cst_44 = arith.constant 9.99999974E-6 : f32
    %220 = vector.broadcast %cst_44 : f32 to vector<1x1xf32>
    %221 = arith.addf %219, %220 : vector<1x1xf32>
    %222 = math.rsqrt %221 : vector<1x1xf32>
    %223 = vector.broadcast %207 : f32 to vector<1x1xf32>
    %224 = arith.mulf %222, %223 : vector<1x1xf32>
    %225 = vector.broadcast %215 : vector<1x1xf32> to vector<1x128xf32>
    %226 = arith.subf %98, %225 : vector<1x128xf32>
    %227 = vector.broadcast %224 : vector<1x1xf32> to vector<1x128xf32>
    %228 = arith.mulf %226, %227 : vector<1x128xf32>
    %229 = vector.broadcast %208 : f32 to vector<1x128xf32>
    %230 = arith.addf %228, %229 : vector<1x128xf32>
    %cst_45 = arith.constant 0.000000e+00 : f32
    %231 = vector.broadcast %cst_45 : f32 to vector<1x128xf32>
    %232 = arith.maximumf %230, %231 : vector<1x128xf32>
    %233 = arith.mulf %232, %7 : vector<1x128xf32>
    %c24 = arith.constant 24 : index
    %234 = memref.load %arg2[%c24] : memref<42xf32, #tpu.memory_space<smem>>
    %235 = vector.broadcast %234 : f32 to vector<1x128xf32>
    %236 = arith.mulf %235, %125 : vector<1x128xf32>
    %c25 = arith.constant 25 : index
    %237 = memref.load %arg2[%c25] : memref<42xf32, #tpu.memory_space<smem>>
    %238 = vector.broadcast %237 : f32 to vector<1x128xf32>
    %239 = arith.mulf %238, %152 : vector<1x128xf32>
    %240 = arith.addf %236, %239 : vector<1x128xf32>
    %c26 = arith.constant 26 : index
    %241 = memref.load %arg2[%c26] : memref<42xf32, #tpu.memory_space<smem>>
    %242 = vector.broadcast %241 : f32 to vector<1x128xf32>
    %243 = arith.mulf %242, %179 : vector<1x128xf32>
    %244 = arith.addf %240, %243 : vector<1x128xf32>
    %c27 = arith.constant 27 : index
    %245 = memref.load %arg2[%c27] : memref<42xf32, #tpu.memory_space<smem>>
    %246 = vector.broadcast %245 : f32 to vector<1x128xf32>
    %247 = arith.mulf %246, %206 : vector<1x128xf32>
    %248 = arith.addf %244, %247 : vector<1x128xf32>
    %c28 = arith.constant 28 : index
    %249 = memref.load %arg2[%c28] : memref<42xf32, #tpu.memory_space<smem>>
    %250 = vector.broadcast %249 : f32 to vector<1x128xf32>
    %251 = arith.mulf %250, %233 : vector<1x128xf32>
    %252 = arith.addf %248, %251 : vector<1x128xf32>
    %c34 = arith.constant 34 : index
    %253 = memref.load %arg2[%c34] : memref<42xf32, #tpu.memory_space<smem>>
    %254 = vector.broadcast %253 : f32 to vector<1x128xf32>
    %255 = arith.addf %252, %254 : vector<1x128xf32>
    %cst_46 = arith.constant 0.000000e+00 : f32
    %256 = vector.broadcast %cst_46 : f32 to vector<1x128xf32>
    %257 = arith.maximumf %255, %256 : vector<1x128xf32>
    %c29 = arith.constant 29 : index
    %258 = memref.load %arg2[%c29] : memref<42xf32, #tpu.memory_space<smem>>
    %259 = vector.broadcast %258 : f32 to vector<1x128xf32>
    %260 = arith.mulf %259, %125 : vector<1x128xf32>
    %c30 = arith.constant 30 : index
    %261 = memref.load %arg2[%c30] : memref<42xf32, #tpu.memory_space<smem>>
    %262 = vector.broadcast %261 : f32 to vector<1x128xf32>
    %263 = arith.mulf %262, %152 : vector<1x128xf32>
    %264 = arith.addf %260, %263 : vector<1x128xf32>
    %c31 = arith.constant 31 : index
    %265 = memref.load %arg2[%c31] : memref<42xf32, #tpu.memory_space<smem>>
    %266 = vector.broadcast %265 : f32 to vector<1x128xf32>
    %267 = arith.mulf %266, %179 : vector<1x128xf32>
    %268 = arith.addf %264, %267 : vector<1x128xf32>
    %c32 = arith.constant 32 : index
    %269 = memref.load %arg2[%c32] : memref<42xf32, #tpu.memory_space<smem>>
    %270 = vector.broadcast %269 : f32 to vector<1x128xf32>
    %271 = arith.mulf %270, %206 : vector<1x128xf32>
    %272 = arith.addf %268, %271 : vector<1x128xf32>
    %c33 = arith.constant 33 : index
    %273 = memref.load %arg2[%c33] : memref<42xf32, #tpu.memory_space<smem>>
    %274 = vector.broadcast %273 : f32 to vector<1x128xf32>
    %275 = arith.mulf %274, %233 : vector<1x128xf32>
    %276 = arith.addf %272, %275 : vector<1x128xf32>
    %c35 = arith.constant 35 : index
    %277 = memref.load %arg2[%c35] : memref<42xf32, #tpu.memory_space<smem>>
    %278 = vector.broadcast %277 : f32 to vector<1x128xf32>
    %279 = arith.addf %276, %278 : vector<1x128xf32>
    %cst_47 = arith.constant 0.000000e+00 : f32
    %280 = vector.broadcast %cst_47 : f32 to vector<1x128xf32>
    %281 = arith.maximumf %279, %280 : vector<1x128xf32>
    %c36 = arith.constant 36 : index
    %282 = memref.load %arg2[%c36] : memref<42xf32, #tpu.memory_space<smem>>
    %283 = vector.broadcast %282 : f32 to vector<1x128xf32>
    %284 = arith.mulf %283, %257 : vector<1x128xf32>
    %c37 = arith.constant 37 : index
    %285 = memref.load %arg2[%c37] : memref<42xf32, #tpu.memory_space<smem>>
    %286 = vector.broadcast %285 : f32 to vector<1x128xf32>
    %287 = arith.mulf %286, %281 : vector<1x128xf32>
    %288 = arith.addf %284, %287 : vector<1x128xf32>
    %c40 = arith.constant 40 : index
    %289 = memref.load %arg2[%c40] : memref<42xf32, #tpu.memory_space<smem>>
    %290 = vector.broadcast %289 : f32 to vector<1x128xf32>
    %291 = arith.addf %288, %290 : vector<1x128xf32>
    %c38 = arith.constant 38 : index
    %292 = memref.load %arg2[%c38] : memref<42xf32, #tpu.memory_space<smem>>
    %293 = vector.broadcast %292 : f32 to vector<1x128xf32>
    %294 = arith.mulf %293, %257 : vector<1x128xf32>
    %c39 = arith.constant 39 : index
    %295 = memref.load %arg2[%c39] : memref<42xf32, #tpu.memory_space<smem>>
    %296 = vector.broadcast %295 : f32 to vector<1x128xf32>
    %297 = arith.mulf %296, %281 : vector<1x128xf32>
    %298 = arith.addf %294, %297 : vector<1x128xf32>
    %c41 = arith.constant 41 : index
    %299 = memref.load %arg2[%c41] : memref<42xf32, #tpu.memory_space<smem>>
    %300 = vector.broadcast %299 : f32 to vector<1x128xf32>
    %301 = arith.addf %298, %300 : vector<1x128xf32>
    %302 = tpu.concatenate %291, %301 in 0 : vector<1x128xf32>, vector<1x128xf32> -> vector<2x128xf32>
    %c0_48 = arith.constant 0 : index
    %c0_49 = arith.constant 0 : index
    %303 = vector.load %arg3[%c0_48, %c0_49] : memref<2x128xf32, #tpu.memory_space<vmem>>, vector<2x128xf32>
    tpu.vector_store %arg3[%c0_48, %c0_49], %302 {strides = array<i32>} : memref<2x128xf32, #tpu.memory_space<vmem>>, vector<2x128xf32>,
    return
  }
}

</mosaic_0001>

<bundles_post_ra>
// kernel: tpu_custom_call.1
= control target key start
LH: loop header
LB: loop body
LE: loop exit
PB: predicated region body
PF: predicated region fallthrough
CT: control target
= control target key end

     0   :  { %8 = vsyncpa [#allocation3], 0  ;;  %s780_s0 = inlined_call_operand.hbm [shape: f32[32,128], index: 0, kind: input, shape index: {}]   ;;  %s781_s1 = inlined_call_operand.vmem [shape: f32[2,32], index: 1, kind: input, shape index: {}]   ;;  %s782_s2 = inlined_call_operand.vmem [shape: f32[42], index: 2, kind: input, shape index: {}]   ;;  %s783_s3 = inlined_call_operand.hbm [shape: f32[2,128], index: 3, kind: output, shape index: {}]  }
   0x1   :  { %9 = vsyncpa [#allocation5], 0 }
   0x2   :  { %10 = vsyncpa [#allocation4], 0  ;;  %s574_s12 = smov [#allocation2]   ;;  %s31_s16 = sshll.u32 %s782_s2, 4  ;;  %s32_s16 = int_to_ptr.vmem [resolvable:$true] %s31_s16 }
   0x3   :  { %s16_s13 = sshll.u32 %s574_s12, 4  ;;  %s512_s19 = scalar_lea.hbm %s780_s0, 512  ;;  %s17_s13 = int_to_ptr.vmem [resolvable:$true] %s16_s13 }
   0x4   :  { %p513_p0 = scmp.ne.s32.totalorder %s780_s0, %s512_s19  ;;  %p516_p1 = scmp.lt.u32.totalorder %s512_s19, %s780_s0 }
   0x6   :  { %p518_p2 = pnand %p516_p1, %p513_p0 }
   0x8   :  { %521 = shalt.err (!%p518_p2)
}
   0x9   :  { %s522_s24 = scalar_lea.vmem %s17_s13, 512  ;;  %p527_p4 = scmp.lt.s32.totalorder %s17_s13, %s17_s13 }
   0xa   :  { %p523_p3 = scmp.ne.s32.totalorder %s17_s13, %s522_s24  ;;  %p528_p5 = scmp.lt.s32.totalorder %s522_s24, %s522_s24 }
   0xc   :  { %p529_p6 = por %p528_p5, %p527_p4 }
   0xe   :  { %p530_p7 = pnand %p529_p6, %p523_p3 }
  0x10   :  { %533 = shalt.err (!%p530_p7)
}
  0x11   :  { %s575_s2 = smov 128   ;;  %s576_s25 = smov 8  }
  0x12   :  { %22 = dma.hbm_to_vmem [thread:$0]  %s780_s0, 512, %s17_s13, [#allocation3], %s575_s2, %s575_s2, %s576_s25  }
  0x13   :  { %s534_s28 = scalar_lea.vmem %s32_s16, 16  ;;  %p539_p9 = scmp.lt.s32.totalorder %s32_s16, %s32_s16 }
  0x14   :  { %p535_p8 = scmp.ne.s32.totalorder %s32_s16, %s534_s28  ;;  %p540_p10 = scmp.lt.s32.totalorder %s534_s28, %s534_s28 }
  0x16   :  { %p541_p11 = por %p540_p10, %p539_p9 }
  0x18   :  { %p542_p12 = pnand %p541_p11, %p535_p8 }
  0x1a   :  { %545 = shalt.err (!%p542_p12)
}
  0x1b   :  { %s577_s29 = smov [#allocation6]  }
  0x1c   :  { %34 = dma.vmem_to_smem %s32_s16, 16, %s577_s29, [#allocation5]  }
  0x1d   :  { %568 = dma.done.wait [#allocation3], 512  }
  0x1e   :  { %569 = vsyncadd [#allocation3], 4294966784 }
  0x1f   :  { %570 = dma.done.wait [#allocation5], 16  }
  0x20   :  { %571 = vsyncadd [#allocation5], 4294967280 }
  0x21   :  { %41 = sfence }
  0x22   :  { %v42_v0 = vld [vmem:[#allocation2] sm:$0xff]  ;;  %v43_v1 = vld [vmem:[#allocation2 + $0x8] sm:$0xff]  ;;  %v44_v2 = vld [vmem:[#allocation2 + $0x10] sm:$0xff]  ;;  %v578_v3 = vmov 0.0|0.0   ;;  %vm579_vm0 = vmmov 0   ;;  %v580_v6 = vmov 0.0   ;;  %v121_v30 = vlaneseq }
  0x23   :  { %484 = vmatprep.subr.bf16.mxu0 %v578_v3  ;;  %v485_v4 = vpack.c.bf16 %v43_v1, %v42_v0  ;;  %v45_v5 = vld [vmem:[#allocation2 + $0x18] sm:$0xff]  ;;  %481 = vmatprep.mubr.msk.f32.mxu0 %vm579_vm0, %v580_v6  ;;  %v46_v8 = vld [vmem:[%s781_s1] sm:$0x3]  ;;  %vm47_vm1 = vcmask 261120   ;;  %vm152_vm2 = vcmask 1041409   ;;  %vm128_vm3 = vcmask 1040384  }
  0x24   :  { %v488_v7 = vpack.c.bf16 %v45_v5, %v44_v2  ;;  %s428_s1 = sld [smem:[#allocation6 + $0x1]]  ;;  %s429_s4 = sld [smem:[#allocation6 + $0x3]]  ;;  %v122_v32 = vand.u32 127, %v121_v30 }
  0x25   :  { %486 = vmatpush3.bf16.msra.mxu0 %v485_v4  ;;  %s126_s5 = sld [smem:[#allocation6]]  ;;  %s427_s6 = sld [smem:[#allocation6 + $0x2]] }
  0x26   :  { %487 = vmatprep.subr.bf16.mxu0 %v578_v3  ;;  %s433_s7 = sld [smem:[#allocation6 + $0x7]]  ;;  %s431_s8 = sld [smem:[#allocation6 + $0x5]]  ;;  %vm123_vm4 = vcmp.lt.s32.totalorder %v122_v32, 8 }
  0x27   :  { %s435_s9 = sld [smem:[#allocation6 + $0x9]]  ;;  %s622_s10 = sld [smem:[#allocation6 + $0x6]]  ;;  %v626_v43 = vsel %vm123_vm4, 1.0, %v580_v6 }
  0x28   :  { %s430_s11 = sld [smem:[#allocation6 + $0x4]]  ;;  %s624_s12 = sld [smem:[#allocation6 + $0x8]] }
  0x29   :  { %489 = vmatpush3.bf16.msra.mxu0 %v488_v7  ;;  %s628_s13 = sld [smem:[#allocation6 + $0xa]]  ;;  %s437_s14 = sld [smem:[#allocation6 + $0xb]] }
  0x2a   :  { %v165_v31 = vstv %s428_s1  ;;  %v169_v36 = vstv %s429_s4  ;;  %s630_s15 = sld [smem:[#allocation6 + $0xd]]  ;;  %s633_s16 = sld [smem:[#allocation6 + $0xc]] }
  0x2b   :  { %v142_v37 = vstv %s126_s5  ;;  %v146_v44 = vstv %s427_s6  ;;  %s680_s17 = sld [smem:[#allocation6 + $0xf]]  ;;  %s686_s18 = sld [smem:[#allocation6 + $0x10]] }
  0x2c   :  { %482 = vmatmul.mubr.msk.f32.vlgmr.msra.gmra.mrb[0].mxu0 %vm47_vm1, %v46_v8  ;;  %v187_v47 = vstv %s433_s7  ;;  %v177_v48 = vstv %s431_s8  ;;  %s688_s19 = sld [smem:[#allocation6 + $0x14]]  ;;  %s693_s20 = sld [smem:[#allocation6 + $0x11]] }
  0x2d   :  { %v197_v51 = vstv %s435_s9  ;;  %v184_v55 = vstv %s622_s10  ;;  %s697_s21 = sld [smem:[#allocation6 + $0x15]]  ;;  %s699_s22 = sld [smem:[#allocation6 + $0xe]] }
  0x2e   :  { %v174_v56 = vstv %s430_s11  ;;  %v194_v57 = vstv %s624_s12  ;;  %s703_s23 = sld [smem:[#allocation6 + $0x16]]  ;;  %s705_s24 = sld [smem:[#allocation6 + $0x13]] }
  0x2f   :  { %v204_v61 = vstv %s628_s13  ;;  %v207_v62 = vstv %s437_s14  ;;  %s708_s2 = sld [smem:[#allocation6 + $0x12]]  ;;  %s714_s25 = sld [smem:[#allocation6 + $0x19]] }
  0x30   :  { %v217_v3 = vstv %s630_s15  ;;  %s716_s26 = sld [smem:[#allocation6 + $0x17]]  ;;  %s718_s27 = sld [smem:[#allocation6 + $0x1e]] }
  0x31   :  { %s722_s28 = sld [smem:[#allocation6 + $0x18]]  ;;  %s724_s29 = sld [smem:[#allocation6 + $0x1d]] }
  0x32   :  { %s729_s0 = sld [smem:[#allocation6 + $0x1a]]  ;;  %s732_s30 = sld [smem:[#allocation6 + $0x1b]] }
  0x33   :  { %s734_s1 = sld [smem:[#allocation6 + $0x1f]]  ;;  %s737_s4 = sld [smem:[#allocation6 + $0x20]] }
  0x34   :  { %s739_s5 = sld [smem:[#allocation6 + $0x1c]]  ;;  %s741_s6 = sld [smem:[#allocation6 + $0x21]] }
  0x35   :  { %s756_s7 = sld [smem:[#allocation6 + $0x22]]  ;;  %s758_s8 = sld [smem:[#allocation6 + $0x23]] }
  0x36   :  { %s462_s9 = sld [smem:[#allocation6 + $0x24]]  ;;  %s463_s10 = sld [smem:[#allocation6 + $0x25]] }
  0x37   :  { %s465_s11 = sld [smem:[#allocation6 + $0x26]]  ;;  %s466_s12 = sld [smem:[#allocation6 + $0x27]] }
  0x38   :  { %s467_s13 = sld [smem:[#allocation6 + $0x29]]  ;;  %s464_s14 = sld [smem:[#allocation6 + $0x28]] }
  0x39   :  { %s581_s15 = smov [#allocation7]  }
  0xff   :  { %v117_v9 = vpop.f32.mrb[0].mxu0 }
 0x100   :  { %v483_v10 = vpop.f32.mrb[1].mxu0  ;;  %v153_v11 = vsel %vm152_vm2, %v117_v9, 0.0  ;;  %v132_v12 = vmul.f32 %v117_v9, %v117_v9  ;;  %v129_v14 = vsel %vm128_vm3, %v117_v9, 0.0 }
 0x101   :  { %154 = vadd.xlane.f32.xlu0 %v153_v11 }
 0x102   :  { %v156_v13 = vsel %vm152_vm2, %v132_v12, 0.0  ;;  %v133_v15 = vsel %vm128_vm3, %v132_v12, 0.0 }
 0x103   :  { %157 = vadd.xlane.f32.xlu1 %v156_v13 }
 0x105   :  { %130 = vadd.xlane.f32.xlu0 %v129_v14 }
 0x107   :  { %134 = vadd.xlane.f32.xlu1 %v133_v15 }
 0x18e   :  { %v155_v16 = vpop.xlane.xlu0 %154 }
 0x18f   :  { %v159_v17 = vmul.f32 0.125, %v155_v16 }
 0x190   :  { %v158_v18 = vpop.xlane.xlu1 %157 }
 0x191   :  { %v161_v19 = vmul.f32 %v159_v17, %v159_v17  ;;  %v160_v20 = vmul.f32 0.125, %v158_v18  ;;  %v167_v34 = vsub.f32 %v117_v9, %v159_v17 }
 0x192   :  { %v131_v21 = vpop.xlane.xlu0 %130 }
 0x193   :  { %v162_v22 = vsub.f32 %v160_v20, %v161_v19  ;;  %v136_v23 = vmul.f32 0.125, %v131_v21 }
 0x194   :  { %v135_v24 = vpop.xlane.xlu1 %134 }
 0x195   :  { %v163_v25 = vadd.f32 1e-05, %v162_v22  ;;  %v138_v26 = vmul.f32 %v136_v23, %v136_v23  ;;  %v137_v27 = vmul.f32 0.125, %v135_v24  ;;  %v144_v41 = vsub.f32 %v117_v9, %v136_v23 }
 0x196   :  { %v214_v9 = vstv %s633_s16  ;;  %s415_s16 = sshll.u32 %s581_s15, 4  ;;  %s416_s16 = int_to_ptr.vmem [resolvable:$true] %s415_s16 }
 0x197   :  { %498 = vrsqrt.f32 %v163_v25  ;;  %v139_v28 = vsub.f32 %v137_v27, %v138_v26  ;;  %p551_p0 = scmp.lt.s32.totalorder %s416_s16, %s416_s16 }
 0x199   :  { %v140_v29 = vadd.f32 1e-05, %v139_v28 }
 0x19b   :  { %500 = vrsqrt.f32 %v140_v29 }
 0x1a1   :  { %v499_v33 = vpop.eup %498 }
 0x1a2   :  { %v166_v35 = vmul.f32 %v499_v33, %v165_v31 }
 0x1a4   :  { %v168_v38 = vmul.f32 %v167_v34, %v166_v35 }
 0x1a5   :  { %v501_v39 = vpop.eup %500 }
 0x1a6   :  { %v170_v40 = vadd.f32 %v169_v36, %v168_v38  ;;  %v143_v42 = vmul.f32 %v501_v39, %v142_v37 }
 0x1a8   :  { %v171_v45 = vmax.f32 %v170_v40, 0.0  ;;  %v145_v46 = vmul.f32 %v144_v41, %v143_v42 }
 0x1aa   :  { %v147_v49 = vadd.f32 %v146_v44, %v145_v46  ;;  %v172_v50 = vmul.f32 %v626_v43, %v171_v45 }
 0x1ac   :  { %v148_v52 = vmax.f32 %v147_v49, 0.0  ;;  %v188_v53 = vmul.f32 %v187_v47, %v172_v50  ;;  %v178_v54 = vmul.f32 %v177_v48, %v172_v50  ;;  %v198_v59 = vmul.f32 %v197_v51, %v172_v50 }
 0x1ad   :  { %v208_v7 = vmul.f32 %v207_v62, %v172_v50  ;;  %v218_v14 = vmul.f32 %v217_v3, %v172_v50 }
 0x1ae   :  { %v149_v58 = vmul.f32 %v626_v43, %v148_v52  ;;  %v190_v60 = vrot.slane %v188_v53, 1  ;;  %v180_v1 = vrot.slane %v178_v54, 1  ;;  %v200_v6 = vrot.slane %v198_v59, 1 }
 0x1af   :  { %v210_v15 = vrot.slane %v208_v7, 1  ;;  %v220_v21 = vrot.slane %v218_v14, 1  ;;  %v265_v14 = vstv %s688_s19 }
 0x1b0   :  { %v185_v63 = vmul.f32 %v184_v55, %v149_v58  ;;  %v175_v0 = vmul.f32 %v174_v56, %v149_v58  ;;  %v195_v2 = vmul.f32 %v194_v57, %v149_v58  ;;  %v205_v8 = vmul.f32 %v204_v61, %v149_v58 }
 0x1b1   :  { %v215_v16 = vmul.f32 %v214_v9, %v149_v58  ;;  %v284_v9 = vstv %s686_s18 }
 0x1b2   :  { %v640_v4 = vadd.f32 %v190_v60, %v185_v63  ;;  %v642_v5 = vadd.f32 %v180_v1, %v175_v0  ;;  %v651_v13 = vadd.f32 %v200_v6, %v195_v2  ;;  %v658_v20 = vadd.f32 %v210_v15, %v205_v8 }
 0x1b3   :  { %v660_v22 = vadd.f32 %v220_v21, %v215_v16  ;;  %v261_v0 = vstv %s680_s17  ;;  %v238_v21 = vstv %s699_s22  ;;  %s546_s17 = scalar_lea.vmem %s416_s16, 32 }
 0x1b4   :  { %v248_v10 = vsel %vm128_vm3, %v640_v4, 0.0  ;;  %v225_v11 = vsel %vm128_vm3, %v642_v5, 0.0  ;;  %v251_v12 = vmul.f32 %v640_v4, %v640_v4  ;;  %v271_v18 = vsel %vm128_vm3, %v651_v13, 0.0  ;;  %p547_p13 = scmp.ne.s32.totalorder %s416_s16, %s546_s17  ;;  %p552_p1 = scmp.lt.s32.totalorder %s546_s17, %s546_s17 }
 0x1b5   :  { %249 = vadd.xlane.f32.xlu1 %v248_v10  ;;  %226 = vadd.xlane.f32.xlu0 %v225_v11  ;;  %v274_v19 = vmul.f32 %v651_v13, %v651_v13  ;;  %v294_v24 = vsel %vm128_vm3, %v658_v20, 0.0  ;;  %v297_v25 = vmul.f32 %v658_v20, %v658_v20  ;;  %v228_v26 = vmul.f32 %v642_v5, %v642_v5 }
 0x1b6   :  { %v252_v17 = vsel %vm128_vm3, %v251_v12, 0.0  ;;  %v320_v29 = vmul.f32 %v660_v22, %v660_v22  ;;  %v317_v31 = vsel %vm128_vm3, %v660_v22, 0.0  ;;  %p553_p2 = por %p552_p1, %p551_p0 }
 0x1b7   :  { %v275_v23 = vsel %vm128_vm3, %v274_v19, 0.0  ;;  %v298_v27 = vsel %vm128_vm3, %v297_v25, 0.0  ;;  %v229_v28 = vsel %vm128_vm3, %v228_v26, 0.0 }
 0x1b8   :  { %v321_v30 = vsel %vm128_vm3, %v320_v29, 0.0  ;;  %p554_p3 = pnand %p553_p2, %p547_p13 }
 0x1b9   :  { %253 = vadd.xlane.f32.xlu1 %v252_v17  ;;  %272 = vadd.xlane.f32.xlu0 %v271_v18  ;;  %v307_v17 = vstv %s693_s20  ;;  %v288_v18 = vstv %s697_s21 }
 0x1bd   :  { %276 = vadd.xlane.f32.xlu1 %v275_v23  ;;  %295 = vadd.xlane.f32.xlu0 %v294_v24 }
 0x1c1   :  { %299 = vadd.xlane.f32.xlu1 %v298_v27  ;;  %230 = vadd.xlane.f32.xlu0 %v229_v28  ;;  %v311_v28 = vstv %s703_s23 }
 0x1c5   :  { %322 = vadd.xlane.f32.xlu1 %v321_v30  ;;  %318 = vadd.xlane.f32.xlu0 %v317_v31 }
 0x242   :  { %v250_v32 = vpop.xlane.xlu1 %249  ;;  %v227_v33 = vpop.xlane.xlu0 %226 }
 0x243   :  { %v255_v34 = vmul.f32 0.125, %v250_v32  ;;  %v676_v41 = vmul.f32 0.125, %v227_v33  ;;  %v242_v32 = vstv %s705_s24  ;;  %v330_v33 = vstv %s708_s2 }
 0x245   :  { %v257_v37 = vmul.f32 %v255_v34, %v255_v34  ;;  %v234_v50 = vmul.f32 %v676_v41, %v676_v41  ;;  %v263_v7 = vsub.f32 %v640_v4, %v255_v34  ;;  %v240_v26 = vsub.f32 %v642_v5, %v676_v41 }
 0x246   :  { %v254_v35 = vpop.xlane.xlu1 %253  ;;  %v273_v36 = vpop.xlane.xlu0 %272 }
 0x247   :  { %v256_v38 = vmul.f32 0.125, %v254_v35  ;;  %v278_v39 = vmul.f32 0.125, %v273_v36 }
 0x249   :  { %v258_v40 = vsub.f32 %v256_v38, %v257_v37  ;;  %v280_v46 = vmul.f32 %v278_v39, %v278_v39  ;;  %v286_v15 = vsub.f32 %v651_v13, %v278_v39 }
 0x24a   :  { %v277_v42 = vpop.xlane.xlu1 %276  ;;  %v296_v44 = vpop.xlane.xlu0 %295 }
 0x24b   :  { %v259_v45 = vadd.f32 1e-05, %v258_v40  ;;  %v279_v47 = vmul.f32 0.125, %v277_v42  ;;  %v678_v48 = vmul.f32 0.125, %v296_v44  ;;  %v334_v42 = vstv %s716_s26 }
 0x24c   :  { %v342_v44 = vstv %s714_s25 }
 0x24d   :  { %502 = vrsqrt.f32 %v259_v45  ;;  %v281_v49 = vsub.f32 %v279_v47, %v280_v46  ;;  %v303_v54 = vmul.f32 %v678_v48, %v678_v48  ;;  %v309_v13 = vsub.f32 %v658_v20, %v678_v48 }
 0x24e   :  { %v300_v51 = vpop.xlane.xlu1 %299  ;;  %v231_v52 = vpop.xlane.xlu0 %230  ;;  %v339_v45 = vstv %s722_s28  ;;  %v362_v46 = vstv %s724_s29  ;;  %v365_v47 = vstv %s718_s27 }
 0x24f   :  { %v282_v53 = vadd.f32 1e-05, %v281_v49  ;;  %v302_v55 = vmul.f32 0.125, %v300_v51  ;;  %v233_v56 = vmul.f32 0.125, %v231_v52  ;;  %v346_v51 = vstv %s729_s0 }
 0x251   :  { %504 = vrsqrt.f32 %v282_v53  ;;  %v304_v57 = vsub.f32 %v302_v55, %v303_v54  ;;  %v235_v58 = vsub.f32 %v233_v56, %v234_v50  ;;  %v350_v53 = vstv %s732_s30 }
 0x252   :  { %v323_v59 = vpop.xlane.xlu1 %322  ;;  %v319_v60 = vpop.xlane.xlu0 %318  ;;  %v369_v54 = vstv %s734_s1 }
 0x253   :  { %v305_v61 = vadd.f32 1e-05, %v304_v57  ;;  %v236_v62 = vadd.f32 1e-05, %v235_v58  ;;  %v690_v63 = vmul.f32 0.125, %v319_v60  ;;  %v325_v1 = vmul.f32 0.125, %v323_v59 }
 0x254   :  { %v354_v59 = vstv %s739_s5  ;;  %v373_v60 = vstv %s737_s4 }
 0x255   :  { %506 = vrsqrt.f32 %v305_v61  ;;  %v326_v2 = vmul.f32 %v690_v63, %v690_v63  ;;  %v332_v39 = vsub.f32 %v660_v22, %v690_v63  ;;  %v377_v61 = vstv %s741_s6 }
 0x256   :  { %508 = vrsqrt.f32 %v236_v62 }
 0x257   :  { %v503_v3 = vpop.eup %502  ;;  %v327_v6 = vsub.f32 %v325_v1, %v326_v2 }
 0x258   :  { %v262_v8 = vmul.f32 %v503_v3, %v261_v0 }
 0x259   :  { %v328_v10 = vadd.f32 1e-05, %v327_v6 }
 0x25a   :  { %v264_v11 = vmul.f32 %v263_v7, %v262_v8 }
 0x25b   :  { %v505_v12 = vpop.eup %504  ;;  %510 = vrsqrt.f32 %v328_v10 }
 0x25c   :  { %v285_v16 = vmul.f32 %v505_v12, %v284_v9  ;;  %v266_v4 = vadd.f32 %v265_v14, %v264_v11 }
 0x25e   :  { %v287_v19 = vmul.f32 %v286_v15, %v285_v16  ;;  %v267_v30 = vmax.f32 %v266_v4, 0.0  ;;  %v358_v15 = vstv %s756_s7  ;;  %v381_v16 = vstv %s758_s8 }
 0x25f   :  { %v507_v23 = vpop.eup %506 }
 0x260   :  { %v509_v24 = vpop.eup %508  ;;  %v308_v25 = vmul.f32 %v507_v23, %v307_v17  ;;  %v289_v27 = vadd.f32 %v288_v18, %v287_v19  ;;  %v268_v37 = vmul.f32 %v626_v43, %v267_v30  ;;  %v395_v23 = vstv %s465_s11 }
 0x261   :  { %v239_v29 = vmul.f32 %v509_v24, %v238_v21  ;;  %v385_v21 = vstv %s462_s9  ;;  %v398_v24 = vstv %s466_s12  ;;  %v402_v30 = vstv %s467_s13 }
 0x262   :  { %v310_v31 = vmul.f32 %v309_v13, %v308_v25  ;;  %v290_v35 = vmax.f32 %v289_v27, 0.0  ;;  %v343_v52 = vmul.f32 %v342_v44, %v268_v37  ;;  %v366_v58 = vmul.f32 %v365_v47, %v268_v37 }
 0x263   :  { %v241_v20 = vmul.f32 %v240_v26, %v239_v29 }
 0x264   :  { %v312_v5 = vadd.f32 %v311_v28, %v310_v31  ;;  %v291_v50 = vmul.f32 %v626_v43, %v290_v35 }
 0x265   :  { %v511_v34 = vpop.eup %510  ;;  %v243_v36 = vadd.f32 %v242_v32, %v241_v20  ;;  %v392_v20 = vstv %s464_s14 }
 0x266   :  { %v331_v38 = vmul.f32 %v511_v34, %v330_v33  ;;  %v313_v40 = vmax.f32 %v312_v5, 0.0  ;;  %v347_v0 = vmul.f32 %v346_v51, %v291_v50  ;;  %v370_v2 = vmul.f32 %v369_v54, %v291_v50 }
 0x267   :  { %v244_v41 = vmax.f32 %v243_v36, 0.0 }
 0x268   :  { %v333_v48 = vmul.f32 %v332_v39, %v331_v38  ;;  %v314_v55 = vmul.f32 %v626_v43, %v313_v40 }
 0x269   :  { %v245_v49 = vmul.f32 %v626_v43, %v244_v41 }
 0x26a   :  { %v335_v22 = vadd.f32 %v334_v42, %v333_v48  ;;  %v351_v7 = vmul.f32 %v350_v53, %v314_v55  ;;  %v374_v9 = vmul.f32 %v373_v60, %v314_v55 }
 0x26b   :  { %v340_v56 = vmul.f32 %v339_v45, %v245_v49  ;;  %v363_v57 = vmul.f32 %v362_v46, %v245_v49 }
 0x26c   :  { %v336_v62 = vmax.f32 %v335_v22, 0.0 }
 0x26d   :  { %v344_v63 = vadd.f32 %v343_v52, %v340_v56  ;;  %v367_v1 = vadd.f32 %v366_v58, %v363_v57 }
 0x26e   :  { %v337_v3 = vmul.f32 %v626_v43, %v336_v62  ;;  %v388_v43 = vstv %s463_s10 }
 0x26f   :  { %v348_v6 = vadd.f32 %v347_v0, %v344_v63  ;;  %v371_v8 = vadd.f32 %v370_v2, %v367_v1 }
 0x270   :  { %v355_v10 = vmul.f32 %v354_v59, %v337_v3  ;;  %v378_v11 = vmul.f32 %v377_v61, %v337_v3 }
 0x271   :  { %v352_v12 = vadd.f32 %v351_v7, %v348_v6  ;;  %v375_v14 = vadd.f32 %v374_v9, %v371_v8 }
 0x273   :  { %v356_v17 = vadd.f32 %v355_v10, %v352_v12  ;;  %v379_v4 = vadd.f32 %v378_v11, %v375_v14 }
 0x275   :  { %v359_v18 = vadd.f32 %v358_v15, %v356_v17  ;;  %v382_v19 = vadd.f32 %v381_v16, %v379_v4 }
 0x277   :  { %v360_v13 = vmax.f32 %v359_v18, 0.0  ;;  %v383_v25 = vmax.f32 %v382_v19, 0.0 }
 0x279   :  { %v386_v26 = vmul.f32 %v385_v21, %v360_v13  ;;  %v389_v27 = vmul.f32 %v388_v43, %v383_v25  ;;  %v396_v28 = vmul.f32 %v395_v23, %v360_v13  ;;  %v399_v29 = vmul.f32 %v398_v24, %v383_v25 }
 0x27b   :  { %v390_v31 = vadd.f32 %v389_v27, %v386_v26  ;;  %v400_v32 = vadd.f32 %v399_v29, %v396_v28 }
 0x27d   :  { %v403_v33 = vadd.f32 %v402_v30, %v400_v32  ;;  %v393_v5 = vadd.f32 %v392_v20, %v390_v31 }
 0x27f   :  { %v405_v34 = vrot.slane %v403_v33, 7 }
 0x281   :  { %v407_v35 = vsel %vm128_vm3, %v393_v5, %v405_v34 }
 0x282   :  { %408 = vst [vmem:[#allocation7] sm:$0x3] %v407_v35 }
 0x283   :  { %557 = shalt.err (!%p554_p3)
}
 0x284   :  { %s558_s20 = scalar_lea.hbm %s783_s3, 32 }
 0x285   :  { %p559_p4 = scmp.ne.s32.totalorder %s783_s3, %s558_s20  ;;  %p562_p5 = scmp.lt.u32.totalorder %s558_s20, %s783_s3 }
 0x287   :  { %p564_p6 = pnand %p562_p5, %p559_p4 }
 0x289   :  { %567 = shalt.err (!%p564_p6)
}
 0x28a   :  { %418 = dma.vmem_to_hbm [thread:$0]  %s416_s16, 32, %s783_s3, [#allocation4]  }
 0x28b   :  { %572 = dma.done.wait [#allocation4], 32  }
 0x28c   :  { %573 = vsyncadd [#allocation4], 4294967264 }
 0x28d   :  { %422 = vsyncpa [#allocation3], 1 }
 0x28e   :  { %423 = vsyncpa [#allocation4], 1 }
 0x28f   :  { %424 = vsyncpa [#allocation5], 1 }

</bundles_post_ra>
